<compile_context>
chip_gen: v5e
topology: v5e:2x2
jax: 0.10.0
libtpu: 0.0.40
codegen_flags: <defaults>
</compile_context>

<pallas_src>
import functools
import math

import jax
import jax.numpy as jnp
import numpy as np
from jax.experimental import pallas as pl
from jax.experimental.pallas import tpu as pltpu


def _round_up(v, m):
    return ((v + m - 1) // m) * m


# murmur3 fmix32 constants + golden-ratio seed mix
_M1 = 0x85EBCA6B
_M2 = 0xC2B2AE35
_GOLDEN = 0x9E3779B9


def _hash_u32(x):
    """murmur3 finalizer: decorrelates sequential integer ids (pure VPU ops)."""
    x = x ^ (x >> jnp.uint32(16))
    x = x * jnp.uint32(_M1)
    x = x ^ (x >> jnp.uint32(13))
    x = x * jnp.uint32(_M2)
    x = x ^ (x >> jnp.uint32(16))
    return x


def _pe_kernel(scale_ref, seed_ref, x_ref, pe_ref, o_ref, *,
               batch, d_model, ts, dropout_p, compute_dtype):
    """out = x + scale * pe (pe replicated over batch), optional fused dropout.

    scale_ref: SMEM (1,) f32
    seed_ref : SMEM (1,) i32          (only used when dropout_p > 0)
    x_ref    : VMEM (ts, B*D)         lane-dense flattened layout
    pe_ref   : VMEM (ts, D)
    o_ref    : VMEM (ts, B*D)
    """
    cdt = compute_dtype
    s = scale_ref[0].astype(cdt)
    pe = pe_ref[...].astype(cdt) * s                       # (ts, D)
    if batch > 1:
        # Replicate across the batch along lanes: out[:, b*D + d] = pe[:, d].
        pe = jnp.concatenate([pe] * batch, axis=-1)        # (ts, B*D)
    val = x_ref[...].astype(cdt) + pe                      # (ts, B*D)

    if dropout_p > 0.0:
        # Fused inverted dropout from a counter-based hash of the GLOBAL
        # element index -> identical mask for any tiling, works on TPU and
        # in interpret mode (no pltpu.prng_* primitives).
        width = batch * d_model
        shape = val.shape
        row0 = (pl.program_id(0) * ts).astype(jnp.uint32)
        rows = jax.lax.broadcasted_iota(jnp.uint32, shape, 0) + row0
        cols = jax.lax.broadcasted_iota(jnp.uint32, shape, 1)
        idx = rows * jnp.uint32(width) + cols              # global flat element id
        seed = seed_ref[0].astype(jnp.uint32)
        bits = _hash_u32(idx + seed * jnp.uint32(_GOLDEN))
        thresh = jnp.uint32(min(int(round(dropout_p * 4294967296.0)), 4294967295))
        keep = bits >= thresh                              # P(drop) == dropout_p
        inv_keep = jnp.asarray(1.0 / (1.0 - dropout_p), dtype=cdt)
        val = jnp.where(keep, val * inv_keep, jnp.zeros_like(val))

    o_ref[...] = val.astype(o_ref.dtype)


def make_positional_encoding_buffers(d_model, max_len=5000, dtype=jnp.float32):
    """Deterministic parameter / buffer construction (matches torch __init__).

    pe is returned 2-D (max_len, d_model); the size-1 batch dim of the torch
    buffer is dropped (it only existed for broadcasting).
    """
    position = jnp.arange(max_len, dtype=jnp.float32)[:, None]
    div_term = jnp.exp(
        jnp.arange(0, d_model, 2, dtype=jnp.float32) * (-math.log(10000.0) / d_model)
    )
    ang = position * div_term
    pe = jnp.zeros((max_len, d_model), dtype=jnp.float32)
    pe = pe.at[:, 0::2].set(jnp.sin(ang))
    pe = pe.at[:, 1::2].set(jnp.cos(ang))
    scale = jnp.ones((1,), dtype=jnp.float32)              # nn.Parameter(torch.ones(1))
    return scale.astype(dtype), pe.astype(dtype)


def _choose_ts(S, B, D, dtype, target_bytes=4 * 1024 * 1024, min_grid=4):
    """Rows per tile, sized by the *padded* VMEM footprint.

    Padded bytes/row = round_up(B*D, 128) * itemsize (lane-dense flattened
    layout); ts is a sublane multiple per dtype (8 f32 / 16 bf16 / 32 int8)
    and capped so the grid keeps >= min_grid steps (megacore on v7x).
    """
    itemsize = jnp.dtype(dtype).itemsize
    sub = {4: 8, 2: 16, 1: 32}.get(itemsize, 8)
    if S <= sub:
        return int(S)
    row_bytes = _round_up(B * D, 128) * itemsize
    rows = max(sub, int(target_bytes // row_bytes))
    cap = max(sub, ((S + min_grid - 1) // min_grid) // sub * sub)
    rows = min(rows, cap)
    rows = max(sub, (rows // sub) * sub)
    return int(min(rows, S))


def positional_encoding_forward(x, scale, pe, *, dropout_p=0.0, seed=0,
                                donate_x=False, ts=None):
    """x: (S, B, D). Returns x + scale * pe[:S] with optional fused dropout.

    dropout_p=0.0 -> eval mode (identity dropout), exactly the PyTorch eval path.
    dropout_p>0   -> training mode, inverted dropout fused in-kernel.
    donate_x=True -> alias x's buffer to the output.
    """
    S, B, D = x.shape
    if pe.ndim == 3:                     # accept torch-style (max_len, 1, d_model)
        pe = pe[:, 0, :]
    if pe.shape[0] < S:
        raise ValueError("sequence longer than positional-encoding max_len")
    if pe.dtype != x.dtype:
        pe = pe.astype(x.dtype)          # stream pe in x.dtype (pe traffic = x/B)

    scale = jnp.asarray(scale, dtype=jnp.float32).reshape((1,))
    seed = jnp.asarray(seed, dtype=jnp.int32).reshape((1,))

    if ts is None:
        ts = _choose_ts(S, B, D, x.dtype)
    grid = (pl.cdiv(S, ts),)

    # bf16 math on v6e/v7x (bf16 VALU); f32 otherwise.
    compute_dtype = jnp.bfloat16 if x.dtype == jnp.bfloat16 else jnp.float32
    # TODO(synk): on v5e (no bf16 VALU) force compute_dtype=float32 for bf16 inputs.

    x2d = x.reshape(S, B * D)            # lane-dense: merges minor dims, free in XLA

    kernel = functools.partial(
        _pe_kernel, batch=B, d_model=D, ts=ts,
        dropout_p=float(dropout_p), compute_dtype=compute_dtype)

    itemsize = jnp.dtype(x.dtype).itemsize
    cost = pl.CostEstimate(
        flops=2 * S * B * D,
        transcendentals=0,
        bytes_accessed=2 * S * B * D * itemsize + S * D * itemsize,
    )

    out2d = pl.pallas_call(
        kernel,
        out_shape=jax.ShapeDtypeStruct((S, B * D), x.dtype),
        grid=grid,
        in_specs=[
            pl.BlockSpec(memory_space=pltpu.MemorySpace.SMEM),   # scale (scalar)
            pl.BlockSpec(memory_space=pltpu.MemorySpace.SMEM),   # seed  (scalar)
            pl.BlockSpec((ts, B * D), lambda i: (i, 0)),         # x tile (lane-dense)
            pl.BlockSpec((ts, D), lambda i: (i, 0)),             # pe tile (no wrapper slice)
        ],
        out_specs=pl.BlockSpec((ts, B * D), lambda i: (i, 0)),
        input_output_aliases=({2: 0} if donate_x else {}),
        compiler_params=pltpu.CompilerParams(
            dimension_semantics=("parallel",),      # v7x: shard grid over 2 TCs
            vmem_limit_bytes=48 * 1024 * 1024,      # 4 MiB tiles x 2 bufs x (in+out) << 48 MiB
        ),
        cost_estimate=cost,
    )(scale, seed, x2d, pe)

    return out2d.reshape(S, B, D)


if __name__ == "__main__":
    # Small shapes consistent with the module: seq=8, batch=2, d_model=32.
    S, B, D = 8, 2, 32
    MAX_LEN = 64

    key = jax.random.PRNGKey(0)
    x = jax.random.normal(key, (S, B, D), dtype=jnp.float32)
    scale, pe = make_positional_encoding_buffers(D, max_len=MAX_LEN)

    # Pure-JAX reference (eval mode).
    ref = x + scale[0] * pe[:S][:, None, :]

    # 1) Eval mode (dropout = identity), auto tile size.
    out = jax.block_until_ready(positional_encoding_forward(x, scale, pe))
    assert out.shape == (S, B, D)
    assert jnp.allclose(out, ref, atol=1e-6), "mismatch vs reference (eval)"

    # 2) Multi-step grid with a ragged trailing block.
    S2 = 20
    x2 = jax.random.normal(jax.random.PRNGKey(1), (S2, B, D), dtype=jnp.float32)
    ref2 = x2 + scale[0] * pe[:S2][:, None, :]
    out2 = jax.block_until_ready(positional_encoding_forward(x2, scale, pe, ts=8))
    assert jnp.allclose(out2, ref2, atol=1e-6), "mismatch vs reference (tiled)"

    # 3) Training mode: fused inverted dropout (p=0.1). Every element must be
    #    exactly 0 (dropped) or ref/(1-p) (kept); drop fraction ~ p.
    p = 0.1
    out_t = jax.block_until_ready(
        positional_encoding_forward(x, scale, pe, dropout_p=p, seed=123))
    out_np, ref_np = np.asarray(out_t), np.asarray(ref)
    assert out_t.shape == (S, B, D)
    assert np.all(np.isfinite(out_np))
    ok = (out_np == 0.0) | (np.abs(out_np - ref_np / (1.0 - p)) < 1e-4)
    assert np.all(ok), "dropout output inconsistent with x + scale*pe"
    frac = float(np.mean(out_np == 0.0))
    assert 0.0 < frac < 0.35, f"implausible drop fraction {frac}"

    # 4) Dropout mask is a function of the GLOBAL element index -> identical
    #    results across different tilings.
    ta = positional_encoding_forward(x2, scale, pe, dropout_p=p, seed=7, ts=8)
    tb = positional_encoding_forward(x2, scale, pe, dropout_p=p, seed=7, ts=16)
    assert jnp.array_equal(jax.block_until_ready(ta), jax.block_until_ready(tb)), \
        "dropout mask not tiling-independent"

    # 5) Aliased (donated-x) path.
    out_d = jax.block_until_ready(
        positional_encoding_forward(x, scale, pe, donate_x=True))
    assert jnp.allclose(out_d, ref, atol=1e-6), "mismatch vs reference (aliased)"

    print("KERNEL_OK")
</pallas_src>

<mosaic_0001>
module attributes {stable_mosaic.version = 11 : i64} {
  func.func @_pe_kernel(%arg0: i32, %arg1: memref<1xf32, #tpu.memory_space<smem>>, %arg2: memref<1xi32, #tpu.memory_space<smem>>, %arg3: memref<8x64xf32, #tpu.memory_space<vmem>>, %arg4: memref<8x32xf32, #tpu.memory_space<vmem>>, %arg5: memref<8x64xf32, #tpu.memory_space<vmem>>) attributes {dimension_semantics = [#tpu.dimension_semantics<parallel>], iteration_bounds = array<i64: 1>, scalar_prefetch = 0 : i64, scratch_operands = 0 : i64, tpu.core_type = #tpu.core_type<tc>, window_params = [{transform_indices = @transform_0, window_bounds = array<i64: 1>}, {transform_indices = @transform_1, window_bounds = array<i64: 1>}, {transform_indices = @transform_2, window_bounds = array<i64: 8, 64>}, {transform_indices = @transform_3, window_bounds = array<i64: 8, 32>}, {transform_indices = @transform_4, window_bounds = array<i64: 8, 64>}]} {
    %c0 = arith.constant 0 : index
    %0 = memref.load %arg1[%c0] : memref<1xf32, #tpu.memory_space<smem>>
    %c0_0 = arith.constant 0 : index
    %c0_1 = arith.constant 0 : index
    %1 = vector.load %arg4[%c0_0, %c0_1] : memref<8x32xf32, #tpu.memory_space<vmem>>, vector<8x32xf32>
    %2 = vector.broadcast %0 : f32 to vector<8x32xf32>
    %3 = arith.mulf %1, %2 : vector<8x32xf32>
    %4 = tpu.concatenate %3, %3 in 1 : vector<8x32xf32>, vector<8x32xf32> -> vector<8x64xf32>
    %c0_2 = arith.constant 0 : index
    %c0_3 = arith.constant 0 : index
    %5 = vector.load %arg3[%c0_2, %c0_3] : memref<8x64xf32, #tpu.memory_space<vmem>>, vector<8x64xf32>
    %6 = arith.addf %5, %4 : vector<8x64xf32>
    %c0_4 = arith.constant 0 : index
    %c0_5 = arith.constant 0 : index
    %7 = vector.load %arg5[%c0_4, %c0_5] : memref<8x64xf32, #tpu.memory_space<vmem>>, vector<8x64xf32>
    tpu.vector_store %arg5[%c0_4, %c0_5], %6 {strides = array<i32>} : memref<8x64xf32, #tpu.memory_space<vmem>>, vector<8x64xf32>,
    return
  }
  func.func @transform_0(%arg0: i32) -> i32 {
    %c0_i32 = arith.constant 0 : i32
    %c0_i32_0 = arith.constant 0 : i32
    return %c0_i32 : i32
  }
  func.func @transform_1(%arg0: i32) -> i32 {
    %c0_i32 = arith.constant 0 : i32
    %c0_i32_0 = arith.constant 0 : i32
    return %c0_i32 : i32
  }
  func.func @transform_2(%arg0: i32) -> (i32, i32) {
    %c0_i32 = arith.constant 0 : i32
    %c0_i32_0 = arith.constant 0 : i32
    return %arg0, %c0_i32 : i32, i32
  }
  func.func @transform_3(%arg0: i32) -> (i32, i32) {
    %c0_i32 = arith.constant 0 : i32
    %c0_i32_0 = arith.constant 0 : i32
    return %arg0, %c0_i32 : i32, i32
  }
  func.func @transform_4(%arg0: i32) -> (i32, i32) {
    %c0_i32 = arith.constant 0 : i32
    %c0_i32_0 = arith.constant 0 : i32
    return %arg0, %c0_i32 : i32, i32
  }
}

</mosaic_0001>

<bundles_post_ra>
// kernel: tpu_custom_call.1
= control target key start
LH: loop header
LB: loop body
LE: loop exit
PB: predicated region body
PF: predicated region fallthrough
CT: control target
= control target key end

     0   :  { %s117_s0 = inlined_call_operand.<no memory space> [shape: f32[1], index: 0, kind: input, shape index: {}]   ;;  %s118_s1 = inlined_call_operand.<no memory space> [shape: s32[1], index: 1, kind: input, shape index: {}]   ;;  %s119_s2 = inlined_call_operand.vmem [shape: f32[8,64], index: 2, kind: input, shape index: {}]   ;;  %s120_s3 = inlined_call_operand.vmem [shape: f32[64,32], index: 3, kind: input, shape index: {}]   ;;  %s121_s4 = inlined_call_operand.hbm [shape: f32[8,64], index: 4, kind: output, shape index: {}]  }
   0x1   :  { %v21_v0 = vld [vmem:[%s120_s3] sm:$0xff]  ;;  %v22_v1 = vstv %s117_s0 }
   0x2   :  { %11 = vsyncpa [#allocation5], 0  ;;  %v23_v2 = vmul.f32 %v22_v1, %v21_v0  ;;  %s78_s1 = smov 32   ;;  %vm28_vm0 = vcmask 261120   ;;  %v30_v3 = vld [vmem:[%s119_s2] sm:$0xff]  ;;  %s79_s21 = smov [#allocation4]  }
   0x3   :  { %s39_s22 = sshll.u32 %s79_s21, 4  ;;  %s41_s25 = sshll.u32 %s121_s4, 4  ;;  %vm32_vm1 = vcmask 523264   ;;  %s40_s22 = int_to_ptr.vmem [resolvable:$true] %s39_s22  ;;  %s42_s25 = int_to_ptr.hbm [resolvable:$true] %s41_s25 }
   0x4   :  { %25 = vrot.lane.b32.xlu0 %v23_v2, %s78_s1 }
  0x76   :  { %v26_v4 = vpop.permute.xlu0 %25 }
  0x77   :  { %v29_v5 = vsel %vm28_vm0, %v23_v2, %v26_v4 }
  0x78   :  { %v31_v6 = vadd.f32 %v30_v3, %v29_v5 }
  0x7a   :  { %33 = vst.msk [vmem:[#allocation4] sm:$0xff] %vm32_vm1, %v31_v6 }
  0x7b   :  { %44 = dma.vmem_to_hbm [thread:$0]  %s40_s22, 128, %s42_s25, [#allocation5]  }
  0x7c   :  { %76 = dma.done.wait [#allocation5], 128  }
  0x7d   :  { %77 = vsyncadd [#allocation5], 4294967168 }
  0x7e   :  { %49 = vsyncpa [#allocation5], 1 }

</bundles_post_ra>
